<compile_context>
chip_gen: v6e
topology: v6e:2x2x1
jax: 0.10.0
libtpu: 0.0.40
codegen_flags: <defaults>
</compile_context>

<pallas_src>
import jax
import jax.numpy as jnp
from jax.experimental import pallas as pl
from jax.experimental.pallas import tpu as pltpu


def ncm_performer_kernel(x_ref, ncm_ref, enc_ref, dec_ref, o_ref):
    # x_ref  : (B, L, 3)  f32 activations for B batch elements
    # ncm_ref: (B, D, D)  per-batch mixing matrices (f32 or bf16)
    # enc_ref: (3, D)     shared encoder (f32)
    # dec_ref: (D, 3)     shared decoder (f32)
    # o_ref  : (B, L, 3)
    B, L, _ = x_ref.shape
    D = enc_ref.shape[-1]

    x = x_ref[...]                                    # (B, L, 3) f32
    enc = enc_ref[...]                                # (3, D) f32
    dec = dec_ref[...]                                # (D, 3) f32
    ncm = ncm_ref[...]                                # (B, D, D) param dtype

    # Stage 1 -- encoder.  K=3 contraction on the MXU: zero-padding the tiny K
    # is free (the MXU has slack in this HBM-bound regime) and it avoids the
    # XLU lane-broadcasts a VPU formulation would need.  The reshape keeps the
    # last dim, so it is a cheap leading-dim merge.
    h = jnp.tanh(
        jnp.dot(x.reshape(B * L, 3), enc, preferred_element_type=jnp.float32)
    )                                                 # (B*L, D) f32

    # Stage 2 -- per-batch mixing, f32 accumulation.  When ncm is bf16, feed
    # bf16 activations so the MXU runs in its 2x-throughput mode.
    h = h.reshape(B, L, D)
    h_mm = h.astype(ncm.dtype) if ncm.dtype == jnp.bfloat16 else h
    h = jnp.tanh(
        jax.lax.dot_general(
            h_mm, ncm,
            dimension_numbers=(((2,), (1,)), ((0,), (0,))),
            preferred_element_type=jnp.float32,
        )
    )                                                 # (B, L, D) f32
    # TODO(synk): for D < 128 this lowers to per-b tiny MXU pushes; if a bundle
    # dump shows the vex slot / result FIFO binding, pack a few batches
    # block-diagonally into one larger push or move this onto the VPU.

    # Stage 3 -- decoder over the flattened block, then sigmoid.
    y = jax.nn.sigmoid(
        jnp.dot(h.reshape(B * L, D), dec, preferred_element_type=jnp.float32)
    )                                                 # (B*L, 3)
    # TODO(synk): output lane dim is 3 -> masked vst; a lane-dense (B, L*3)
    # store would need a last-dim-changing reshape that Mosaic may reject, so
    # the padded (B, L, 3) layout is kept and accounted for in the VMEM budget.
    o_ref[...] = y.reshape(B, L, 3).astype(o_ref.dtype)


def _rup(v, m):
    return -(-v // m) * m


def _block_vmem_bytes(bb, L, D, elem):
    """Padded VMEM footprint of one grid step (double-buffered blocks + f32
    intermediates), honouring the (8,128) sublane/lane tiling."""
    lane = 128
    sub = 8 * max(1, 4 // elem)                       # sublane multiple for packed dtypes
    ncm_blk = bb * _rup(D, sub) * _rup(D, lane) * elem
    act_blk = bb * _rup(L, 8) * lane * 4              # (bb, L, 3): lane 3 pads to 128
    params = _rup(3, 8) * _rup(D, lane) * 4 + _rup(D, 8) * _rup(3, lane) * 4
    dbuf = 2 * (ncm_blk + 2 * act_blk + params)       # pipeline double-buffers every block
    inter = 3 * bb * _rup(L, 8) * _rup(D, lane) * 4   # in-kernel f32 (bb, L, D) slabs
    return dbuf + inter


def _vmem_budget_bytes():
    """(physical VMEM, working budget) for the current TPU generation."""
    phys = 128 * 1024 * 1024
    try:
        info = pltpu.get_tpu_info()
        phys = int(getattr(info, "vmem_capacity_bytes", phys))
    except Exception:
        pass
    # ~40% of physical: ~25 MiB of blocks on v7x (64 MiB/TC), ~51 MiB on
    # v5e/v6e (128 MiB), leaving room for Mosaic internal scratch.
    return phys, max(16 * 1024 * 1024, int(phys * 0.40))


def _pick_block_batch(n, L, D, elem, budget):
    """Pick the per-step batch block size."""
    # Largest block that fits the padded-VMEM budget (doubling + binary search).
    cap = 1
    while cap < n and _block_vmem_bytes(min(cap * 2, n), L, D, elem) <= budget:
        cap = min(cap * 2, n)
    lo, hi = cap, min(cap * 2, n)
    while lo < hi:
        mid = (lo + hi + 1) // 2
        if _block_vmem_bytes(mid, L, D, elem) <= budget:
            lo = mid
        else:
            hi = mid - 1
    cap = max(1, lo)

    # Aim for >= 8 grid steps (>= 4 per v7x TensorCore) so the double-buffer
    # pipeline stays warm, but keep each block's HBM traffic >= ~512 KiB so the
    # ~0.35 us/step overhead stays amortized (bigger blocks beat deeper
    # buffering on v5e/v6e).
    hbm_per_batch = D * D * elem + 2 * L * 3 * 4
    min_for_block = max(1, (512 * 1024) // hbm_per_batch)
    b = min(cap, max(1, -(-n // 8)))
    b = max(b, min(min_for_block, cap))
    b = max(1, min(b, n))

    # Prefer a nearby divisor of n so the last block is not ragged (no wasted
    # padded-batch DMA/compute); otherwise rely on Pallas' last-block masking.
    lowest = max(1, b - min(b // 2, 4096))
    for d in range(b, lowest - 1, -1):
        if n % d == 0:
            return d
    return b


def ncm_performer(x, ncm, encoder, decoder, *, block_batch=None):
    """NCMPerformer forward.

    x: (n, L, 3) f32; ncm: (n, D, D) or (n, D*D) in f32 or bf16 (cast to bf16
    once upstream for the half-HBM-bandwidth path -- no cast happens here);
    encoder: (1, 3, D); decoder: (1, D, 3).
    """
    n, L, _ = x.shape
    D = encoder.shape[-1]
    ncm = ncm.reshape(n, D, D)                         # mirrors ncm.view(n, D, D); no dtype cast
    enc2d = encoder.reshape(3, D).astype(jnp.float32)  # few KiB: keep f32 even on bf16 path
    dec2d = decoder.reshape(D, 3).astype(jnp.float32)

    elem = jnp.dtype(ncm.dtype).itemsize
    phys_vmem, budget = _vmem_budget_bytes()
    B = block_batch if block_batch is not None else _pick_block_batch(n, L, D, elem, budget)
    grid = pl.cdiv(n, B)

    vmem_limit = int(
        min(phys_vmem - 8 * 1024 * 1024,
            max(32 * 1024 * 1024, int(1.25 * _block_vmem_bytes(B, L, D, elem))))
    )

    flops = 2 * n * L * D * (D + 6)                    # enc + ncm + dec matmuls
    transcendentals = n * L * (2 * D + 3)              # two tanh layers + sigmoid
    bytes_accessed = n * (D * D * elem + 2 * L * 3 * 4) + (3 * D + D * 3) * 4

    out = pl.pallas_call(
        ncm_performer_kernel,
        out_shape=jax.ShapeDtypeStruct((n, L, 3), x.dtype),
        grid_spec=pltpu.PrefetchScalarGridSpec(
            num_scalar_prefetch=0,
            grid=(grid,),
            in_specs=[
                pl.BlockSpec((B, L, 3), lambda i: (i, 0, 0)),
                pl.BlockSpec((B, D, D), lambda i: (i, 0, 0)),
                pl.BlockSpec((3, D), lambda i: (0, 0)),
                pl.BlockSpec((D, 3), lambda i: (0, 0)),
            ],
            out_specs=pl.BlockSpec((B, L, 3), lambda i: (i, 0, 0)),
        ),
        compiler_params=pltpu.CompilerParams(
            dimension_semantics=("parallel",),
            vmem_limit_bytes=vmem_limit,
        ),
        cost_estimate=pl.CostEstimate(
            flops=flops,
            transcendentals=transcendentals,
            bytes_accessed=bytes_accessed,
        ),
    )(x, ncm, enc2d, dec2d)
    return out


def ncm_performer_ref(x, ncm, encoder, decoder):
    """Pure-JAX f32 reference matching the PyTorch forward."""
    n = x.shape[0]
    D = encoder.shape[-1]
    h = jnp.tanh(jnp.einsum("nlk,kd->nld", x, encoder[0]))
    h = jnp.tanh(jnp.einsum("nld,nde->nle", h, ncm.reshape(n, D, D)))
    y = jax.nn.sigmoid(jnp.einsum("nld,dk->nlk", h, decoder[0]))
    return y


if __name__ == "__main__":
    n, L, D = 8, 16, 32

    key = jax.random.PRNGKey(0)
    k_enc, k_dec, k_x, k_ncm = jax.random.split(key, 4)

    # Parameters (mirror torch.randn shapes in __init__).
    encoder = jax.random.normal(k_enc, (1, 3, D), dtype=jnp.float32)
    decoder = jax.random.normal(k_dec, (1, D, 3), dtype=jnp.float32)

    # Inputs.
    x = jax.random.normal(k_x, (n, L, 3), dtype=jnp.float32)
    ncm = jax.random.normal(k_ncm, (n, D, D), dtype=jnp.float32)

    ref = ncm_performer_ref(x, ncm, encoder, decoder)

    # f32 path: ncm used as-is (no wrapper cast), must track the reference.
    out_f32 = jax.block_until_ready(ncm_performer(x, ncm, encoder, decoder))
    assert out_f32.shape == (n, L, 3)
    assert jnp.allclose(out_f32, ref, atol=1e-4, rtol=1e-5), "f32 path mismatch"

    # Fast path: ncm cast to bf16 ONCE upstream (half the HBM bytes on the
    # dominant stream); kernel keeps f32 accumulation and f32 enc/dec.
    out_bf16 = jax.block_until_ready(
        ncm_performer(x, ncm.astype(jnp.bfloat16), encoder, decoder))
    assert out_bf16.shape == (n, L, 3)
    assert jnp.allclose(out_bf16, ref, atol=1e-1, rtol=0.0), "bf16 path mismatch"

    print("KERNEL_OK")
</pallas_src>

<mosaic_0001>
module attributes {stable_mosaic.version = 11 : i64} {
  func.func @ncm_performer_kernel(%arg0: i32, %arg1: memref<8x16x3xf32, #tpu.memory_space<vmem>>, %arg2: memref<8x32x32xf32, #tpu.memory_space<vmem>>, %arg3: memref<3x32xf32, #tpu.memory_space<vmem>>, %arg4: memref<32x3xf32, #tpu.memory_space<vmem>>, %arg5: memref<8x16x3xf32, #tpu.memory_space<vmem>>) attributes {dimension_semantics = [#tpu.dimension_semantics<parallel>], iteration_bounds = array<i64: 1>, scalar_prefetch = 0 : i64, scratch_operands = 0 : i64, tpu.core_type = #tpu.core_type<tc>, window_params = [{transform_indices = @transform_0, window_bounds = array<i64: 8, 16, 3>}, {transform_indices = @transform_1, window_bounds = array<i64: 8, 32, 32>}, {pipeline_mode = #tpu.pipeline_mode<synchronous>, transform_indices = @transform_2, window_bounds = array<i64: 3, 32>}, {pipeline_mode = #tpu.pipeline_mode<synchronous>, transform_indices = @transform_3, window_bounds = array<i64: 32, 3>}, {transform_indices = @transform_4, window_bounds = array<i64: 8, 16, 3>}]} {
    %c0 = arith.constant 0 : index
    %c0_0 = arith.constant 0 : index
    %c0_1 = arith.constant 0 : index
    %0 = vector.load %arg1[%c0, %c0_0, %c0_1] : memref<8x16x3xf32, #tpu.memory_space<vmem>>, vector<8x16x3xf32>
    %c0_2 = arith.constant 0 : index
    %c0_3 = arith.constant 0 : index
    %1 = vector.load %arg3[%c0_2, %c0_3] : memref<3x32xf32, #tpu.memory_space<vmem>>, vector<3x32xf32>
    %c0_4 = arith.constant 0 : index
    %c0_5 = arith.constant 0 : index
    %2 = vector.load %arg4[%c0_4, %c0_5] : memref<32x3xf32, #tpu.memory_space<vmem>>, vector<32x3xf32>
    %c0_6 = arith.constant 0 : index
    %c0_7 = arith.constant 0 : index
    %c0_8 = arith.constant 0 : index
    %3 = vector.load %arg2[%c0_6, %c0_7, %c0_8] : memref<8x32x32xf32, #tpu.memory_space<vmem>>, vector<8x32x32xf32>
    %4 = vector.shape_cast %0 : vector<8x16x3xf32> to vector<128x3xf32>
    %cst = arith.constant dense<0.000000e+00> : vector<128x32xf32>
    %5 = tpu.matmul %4, %1, %cst {dimension_numbers = #tpu.dot_dimension_numbers<[1], [0], [0], [1], [0, 0, 1, 1], [], []>} : vector<128x3xf32>, vector<3x32xf32>, vector<128x32xf32> -> vector<128x32xf32>
    %6 = math.tanh %5 : vector<128x32xf32>
    %7 = vector.shape_cast %6 : vector<128x32xf32> to vector<8x16x32xf32>
    %cst_9 = arith.constant dense<0.000000e+00> : vector<8x16x32xf32>
    %8 = tpu.matmul %7, %3, %cst_9 {dimension_numbers = #tpu.dot_dimension_numbers<[2], [1], [1], [2], [0, 0, 0, 1, 1, 2], [0], [0]>} : vector<8x16x32xf32>, vector<8x32x32xf32>, vector<8x16x32xf32> -> vector<8x16x32xf32>
    %9 = math.tanh %8 : vector<8x16x32xf32>
    %10 = vector.shape_cast %9 : vector<8x16x32xf32> to vector<128x32xf32>
    %cst_10 = arith.constant dense<0.000000e+00> : vector<128x3xf32>
    %11 = tpu.matmul %10, %2, %cst_10 {dimension_numbers = #tpu.dot_dimension_numbers<[1], [0], [0], [1], [0, 0, 1, 1], [], []>} : vector<128x32xf32>, vector<32x3xf32>, vector<128x3xf32> -> vector<128x3xf32>
    %12 = arith.negf %11 : vector<128x3xf32>
    %13 = math.exp %12 : vector<128x3xf32>
    %cst_11 = arith.constant 1.000000e+00 : f32
    %14 = vector.broadcast %cst_11 : f32 to vector<128x3xf32>
    %15 = arith.addf %14, %13 : vector<128x3xf32>
    %16 = arith.divf %14, %15 : vector<128x3xf32>
    %17 = vector.shape_cast %16 : vector<128x3xf32> to vector<8x16x3xf32>
    %c0_12 = arith.constant 0 : index
    %c0_13 = arith.constant 0 : index
    %c0_14 = arith.constant 0 : index
    %18 = vector.load %arg5[%c0_12, %c0_13, %c0_14] : memref<8x16x3xf32, #tpu.memory_space<vmem>>, vector<8x16x3xf32>
    tpu.vector_store %arg5[%c0_12, %c0_13, %c0_14], %17 {strides = array<i32>} : memref<8x16x3xf32, #tpu.memory_space<vmem>>, vector<8x16x3xf32>,
    return
  }
  func.func @transform_0(%arg0: i32) -> (i32, i32, i32) {
    %c0_i32 = arith.constant 0 : i32
    %c0_i32_0 = arith.constant 0 : i32
    %c0_i32_1 = arith.constant 0 : i32
    return %arg0, %c0_i32, %c0_i32_0 : i32, i32, i32
  }
  func.func @transform_1(%arg0: i32) -> (i32, i32, i32) {
    %c0_i32 = arith.constant 0 : i32
    %c0_i32_0 = arith.constant 0 : i32
    %c0_i32_1 = arith.constant 0 : i32
    return %arg0, %c0_i32, %c0_i32_0 : i32, i32, i32
  }
  func.func @transform_2(%arg0: i32) -> (i32, i32) {
    %c0_i32 = arith.constant 0 : i32
    %c0_i32_0 = arith.constant 0 : i32
    %c0_i32_1 = arith.constant 0 : i32
    return %c0_i32, %c0_i32_0 : i32, i32
  }
  func.func @transform_3(%arg0: i32) -> (i32, i32) {
    %c0_i32 = arith.constant 0 : i32
    %c0_i32_0 = arith.constant 0 : i32
    %c0_i32_1 = arith.constant 0 : i32
    return %c0_i32, %c0_i32_0 : i32, i32
  }
  func.func @transform_4(%arg0: i32) -> (i32, i32, i32) {
    %c0_i32 = arith.constant 0 : i32
    %c0_i32_0 = arith.constant 0 : i32
    %c0_i32_1 = arith.constant 0 : i32
    return %arg0, %c0_i32, %c0_i32_0 : i32, i32, i32
  }
}

</mosaic_0001>

<bundles_post_ra>
// kernel: tpu_custom_call.1
= control target key start
LH: loop header
LB: loop body
LE: loop exit
PB: predicated region body
PF: predicated region fallthrough
CT: control target
= control target key end

     0   :  { %9 = vsyncpa [#allocation3], 0  ;;  %s1724_s15 = smov [#allocation2]   ;;  %s1933_s0 = inlined_call_operand.vmem [shape: f32[8,16,3], index: 0, kind: input, shape index: {}]   ;;  %s1934_s1 = inlined_call_operand.hbm [shape: f32[8,32,32], index: 1, kind: input, shape index: {}]   ;;  %s1935_s2 = inlined_call_operand.vmem [shape: f32[3,32], index: 2, kind: input, shape index: {}]   ;;  %s1936_s3 = inlined_call_operand.vmem [shape: f32[32,3], index: 3, kind: input, shape index: {}]   ;;  %s1937_s4 = inlined_call_operand.vmem [shape: f32[8,16,3], index: 4, kind: output, shape index: {}]  }
   0x1   :  { %s17_s16 = sshll.u32 %s1724_s15, 4  ;;  %s18_s16 = int_to_ptr.vmem [resolvable:$true] %s17_s16 }
   0x2   :  { %s1710_s17 = scalar_lea.vmem %s18_s16, 4096  ;;  %p1715_p1 = scmp.lt.s32.totalorder %s18_s16, %s18_s16 }
   0x3   :  { %p1711_p0 = scmp.ne.s32.totalorder %s18_s16, %s1710_s17  ;;  %p1716_p2 = scmp.lt.s32.totalorder %s1710_s17, %s1710_s17 }
   0x5   :  { %p1717_p3 = por %p1716_p2, %p1715_p1 }
   0x7   :  { %p1718_p4 = pnand %p1717_p3, %p1711_p0 }
   0x9   :  { %1721 = shalt.err (!%p1718_p4)
}
   0xa   :  { %s1725_s18 = smov 128   ;;  %s1726_s19 = smov 8  }
   0xb   :  { %23 = dma.hbm_to_vmem [thread:$0]  %s1934_s1, 4096, %s18_s16, [#allocation3], %s1725_s18, %s1725_s18, %s1726_s19  }
   0xc   :  { %1722 = dma.done.wait [#allocation3], 4096  }
   0xd   :  { %1723 = vsyncadd [#allocation3], 4294963200  ;;  %vm133_vm0 = vcmask 1042432   ;;  %vm84_vm1 = vcmask 23552   ;;  %v47_v0 = vld [vmem:[%s1935_s2] sm:$0x7] }
   0xe   :  { %v31_v1 = vld [vmem:[%s1933_s0] sm:$0xff]  ;;  %v32_v2 = vld [vmem:[%s1933_s0 + $0x8] sm:$0xff]  ;;  %1423 = vmatprep.subr.msk.mxu0 %vm133_vm0, %v47_v0  ;;  %v33_v3 = vld [vmem:[%s1933_s0 + $0x10] sm:$0xff]  ;;  %1569 = vmatprep.subr.msk.mxu1 %vm133_vm0, %v47_v0  ;;  %vm298_vm2 = vcmask 261120  }
   0xf   :  { %1425 = vmatprep.mubr.msk.f32.mxu0 %vm84_vm1, %v31_v1  ;;  %1424 = vmatpush3.msk.msra.mxu0 %vm133_vm0, %v47_v0  ;;  %v39_v4 = vld [vmem:[%s1933_s0 + $0x40] sm:$0xff]  ;;  %v40_v5 = vld [vmem:[%s1933_s0 + $0x48] sm:$0xff]  ;;  %v41_v6 = vld [vmem:[%s1933_s0 + $0x50] sm:$0xff] }
  0x10   :  { %1426 = vmatmul.mubr.msk.f32.vlgmr.msra.gmra.mxu0 %vm84_vm1, %v32_v2  ;;  %1570 = vmatpush3.msk.msra.mxu1 %vm133_vm0, %v47_v0  ;;  %v34_v7 = vld [vmem:[%s1933_s0 + $0x18] sm:$0xff]  ;;  %v35_v8 = vld [vmem:[%s1933_s0 + $0x20] sm:$0xff]  ;;  %v36_v11 = vld [vmem:[%s1933_s0 + $0x28] sm:$0xff] }
  0x11   :  { %1428 = vmatprep.mubr.msk.f32.mxu0 %vm84_vm1, %v33_v3  ;;  %1437 = vmatprep.mubr.msk.f32.mxu1 %vm84_vm1, %v39_v4  ;;  %v42_v9 = vld [vmem:[%s1933_s0 + $0x58] sm:$0xff]  ;;  %v43_v10 = vld [vmem:[%s1933_s0 + $0x60] sm:$0xff]  ;;  %v37_v12 = vld [vmem:[%s1933_s0 + $0x30] sm:$0xff] }
  0x12   :  { %1438 = vmatmul.mubr.msk.f32.vlgmr.msra.gmra.mxu1 %vm84_vm1, %v40_v5  ;;  %v44_v13 = vld [vmem:[%s1933_s0 + $0x68] sm:$0xff]  ;;  %v45_v14 = vld [vmem:[%s1933_s0 + $0x70] sm:$0xff]  ;;  %v38_v15 = vld [vmem:[%s1933_s0 + $0x38] sm:$0xff] }
  0x13   :  { %1440 = vmatprep.mubr.msk.f32.mxu1 %vm84_vm1, %v41_v6  ;;  %v46_v16 = vld [vmem:[%s1933_s0 + $0x78] sm:$0xff]  ;;  %v54_v18 = vld [vmem:[#allocation2 + $0x10] sm:$0xff]  ;;  %v53_v19 = vld [vmem:[#allocation2 + $0x8] sm:$0xff] }
  0x14   :  { %1429 = vmatmul.mubr.msk.f32.gmra.mxu0 %vm84_vm1, %v34_v7  ;;  %v55_v17 = vld [vmem:[#allocation2 + $0x18] sm:$0xff]  ;;  %v52_v20 = vld [vmem:[#allocation2] sm:$0xff]  ;;  %v70_v23 = vld [vmem:[#allocation2 + $0x90] sm:$0xff] }
  0x15   :  { %1431 = vmatprep.mubr.msk.f32.mxu0 %vm84_vm1, %v35_v8  ;;  %1449 = vmatprep.subr.mxu1 %v55_v17  ;;  %v59_v21 = vld [vmem:[#allocation2 + $0x38] sm:$0xff]  ;;  %v69_v24 = vld [vmem:[#allocation2 + $0x88] sm:$0xff]  ;;  %v68_v25 = vld [vmem:[#allocation2 + $0x80] sm:$0xff] }
  0x16   :  { %1441 = vmatmul.mubr.msk.f32.gmra.mxu1 %vm84_vm1, %v42_v9  ;;  %v71_v22 = vld [vmem:[#allocation2 + $0x98] sm:$0xff]  ;;  %v58_v43 = vld [vmem:[#allocation2 + $0x30] sm:$0xff]  ;;  %v57_v46 = vld [vmem:[#allocation2 + $0x28] sm:$0xff] }
  0x17   :  { %1443 = vmatprep.mubr.msk.f32.mxu1 %vm84_vm1, %v43_v10  ;;  %1450 = vmatpush3.msra.mxu1 %v55_v17  ;;  %v79_v26 = vld [vmem:[#allocation2 + $0xd8] sm:$0xff]  ;;  %v56_v48 = vld [vmem:[#allocation2 + $0x20] sm:$0xff]  ;;  %v78_v49 = vld [vmem:[#allocation2 + $0xd0] sm:$0xff] }
  0x18   :  { %1432 = vmatmul.mubr.msk.f32.gmra.mxu0 %vm84_vm1, %v36_v11  ;;  %1451 = vmatprep.subr.mxu1 %v54_v18  ;;  %v63_v50 = vld [vmem:[#allocation2 + $0x58] sm:$0xff]  ;;  %v62_v53 = vld [vmem:[#allocation2 + $0x50] sm:$0xff]  ;;  %v77_v54 = vld [vmem:[#allocation2 + $0xc8] sm:$0xff] }
  0x19   :  { %1434 = vmatprep.mubr.msk.f32.mxu0 %vm84_vm1, %v37_v12  ;;  %1452 = vmatpush3.msra.mxu1 %v54_v18  ;;  %v61_v55 = vld [vmem:[#allocation2 + $0x48] sm:$0xff]  ;;  %v76_v56 = vld [vmem:[#allocation2 + $0xc0] sm:$0xff]  ;;  %v67_v61 = vld [vmem:[#allocation2 + $0x78] sm:$0xff] }
  0x1a   :  { %1444 = vmatmul.mubr.msk.f32.gmra.mxu1 %vm84_vm1, %v44_v13  ;;  %1453 = vmatprep.subr.mxu1 %v53_v19  ;;  %v60_v59 = vld [vmem:[#allocation2 + $0x40] sm:$0xff]  ;;  %v66_v1 = vld [vmem:[#allocation2 + $0x70] sm:$0xff]  ;;  %v65_v2 = vld [vmem:[#allocation2 + $0x68] sm:$0xff] }
  0x1b   :  { %1446 = vmatprep.mubr.msk.f32.mxu1 %vm84_vm1, %v45_v14  ;;  %1454 = vmatpush3.msra.mxu1 %v53_v19  ;;  %v64_v3 = vld [vmem:[#allocation2 + $0x60] sm:$0xff]  ;;  %v75_v4 = vld [vmem:[#allocation2 + $0xb8] sm:$0xff]  ;;  %v74_v7 = vld [vmem:[#allocation2 + $0xb0] sm:$0xff] }
  0x1c   :  { %1435 = vmatmul.mubr.msk.f32.gmra.mxu0 %vm84_vm1, %v38_v15  ;;  %1455 = vmatprep.subr.mxu1 %v52_v20  ;;  %v73_v8 = vld [vmem:[#allocation2 + $0xa8] sm:$0xff]  ;;  %v72_v9 = vld [vmem:[#allocation2 + $0xa0] sm:$0xff]  ;;  %v83_v10 = vld [vmem:[#allocation2 + $0xf8] sm:$0xff] }
  0x1d   :  { %1456 = vmatpush3.msra.mxu1 %v52_v20  ;;  %1493 = vmatprep.subr.mxu0 %v71_v22  ;;  %v82_v13 = vld [vmem:[#allocation2 + $0xf0] sm:$0xff]  ;;  %v81_v14 = vld [vmem:[#allocation2 + $0xe8] sm:$0xff]  ;;  %v80_v15 = vld [vmem:[#allocation2 + $0xe0] sm:$0xff] }
  0x1e   :  { %1447 = vmatmul.mubr.msk.f32.gmra.mxu1 %vm84_vm1, %v46_v16  ;;  %1460 = vmatprep.subr.mxu1 %v59_v21  ;;  %v51_v17 = vld [vmem:[%s1936_s3 + $0x18] sm:$0xff]  ;;  %v50_v18 = vld [vmem:[%s1936_s3 + $0x10] sm:$0xff]  ;;  %v49_v19 = vld [vmem:[%s1936_s3 + $0x8] sm:$0xff] }
  0x1f   :  { %1494 = vmatpush3.msra.mxu0 %v71_v22  ;;  %v48_v20 = vld [vmem:[%s1936_s3] sm:$0xff] }
  0x20   :  { %1495 = vmatprep.subr.mxu0 %v70_v23 }
  0x21   :  { %1496 = vmatpush3.msra.mxu0 %v70_v23 }
  0x22   :  { %1497 = vmatprep.subr.mxu0 %v69_v24 }
  0x23   :  { %1498 = vmatpush3.msra.mxu0 %v69_v24 }
  0x24   :  { %1499 = vmatprep.subr.mxu0 %v68_v25 }
  0x25   :  { %1500 = vmatpush3.msra.mxu0 %v68_v25 }
  0x26   :  { %1515 = vmatprep.subr.mxu0 %v79_v26 }
  0xd0   :  { %v1427_v27 = vpop.f32.mrf.mxu0 }
  0xd2   :  { %v203_v28 = vpop.f32.mrf.mxu0  ;;  %v1439_v29 = vpop.f32.mrf.mxu1 }
  0xd3   :  { %1574 = vtanh.f32 %v203_v28 }
  0xd4   :  { %1576 = vtanh.f32 %v1427_v27  ;;  %v1430_v30 = vpop.f32.mrf.mxu0  ;;  %v243_v31 = vpop.f32.mrf.mxu1 }
  0xd5   :  { %1578 = vtanh.f32 %v1439_v29 }
  0xd6   :  { %v213_v32 = vpop.f32.mrf.mxu0  ;;  %1580 = vtanh.f32 %v243_v31  ;;  %v1822_v33 = vpop.f32.mrf.mxu1 }
  0xd7   :  { %1582 = vtanh.f32 %v213_v32 }
  0xd8   :  { %v1433_v34 = vpop.f32.mrf.mxu0  ;;  %v253_v35 = vpop.f32.mrf.mxu1 }
  0xda   :  { %v223_v36 = vpop.f32.mrf.mxu0  ;;  %v1445_v37 = vpop.f32.mrf.mxu1 }
  0xdb   :  { %1584 = vtanh.f32 %v223_v36 }
  0xdc   :  { %1586 = vtanh.f32 %v1430_v30  ;;  %v1436_v38 = vpop.f32.mrf.mxu0  ;;  %v263_v39 = vpop.f32.mrf.mxu1 }
  0xdd   :  { %1588 = vtanh.f32 %v263_v39 }
  0xde   :  { %v233_v41 = vpop.f32.mrf.mxu0  ;;  %1590 = vtanh.f32 %v1445_v37  ;;  %v1448_v57 = vpop.f32.mrf.mxu1 }
  0xdf   :  { %1592 = vtanh.f32 %v233_v41 }
  0xe0   :  { %v1575_v40 = vpop.eup %1574  ;;  %1594 = vtanh.f32 %v1433_v34  ;;  %v273_v63 = vpop.f32.mrf.mxu1 }
  0xe1   :  { %v1577_v42 = vpop.eup %1576  ;;  %1457 = vmatprep.mubr.msk.f32.mxu1 %vm298_vm2, %v1575_v40  ;;  %1596 = vtanh.f32 %v253_v35 }
  0xe2   :  { %v1579_v44 = vpop.eup %1578  ;;  %1458 = vmatmul.mubr.msk.f32.vlgmr.msra.gmra.mxu1 %vm298_vm2, %v1577_v42  ;;  %1598 = vtanh.f32 %v1436_v38 }
  0xe3   :  { %v1581_v45 = vpop.eup %1580  ;;  %1461 = vmatpush3.msra.mxu1 %v59_v21  ;;  %1600 = vtanh.f32 %v273_v63 }
  0xe4   :  { %v1583_v47 = vpop.eup %1582  ;;  %1462 = vmatprep.subr.mxu1 %v58_v43  ;;  %1501 = vmatprep.mubr.msk.f32.mxu0 %vm298_vm2, %v1581_v45  ;;  %1602 = vtanh.f32 %v1822_v33 }
  0xe5   :  { %1463 = vmatpush3.msra.mxu1 %v58_v43  ;;  %1468 = vmatprep.mubr.msk.f32.mxu1 %vm298_vm2, %v1583_v47  ;;  %1604 = vtanh.f32 %v1448_v57 }
  0xe6   :  { %1464 = vmatprep.subr.mxu1 %v57_v46  ;;  %1502 = vmatmul.mubr.msk.f32.vlgmr.msra.gmra.mxu0 %vm298_vm2, %v1579_v44 }
  0xe7   :  { %1465 = vmatpush3.msra.mxu1 %v57_v46  ;;  %1516 = vmatpush3.msra.mxu0 %v79_v26 }
  0xe8   :  { %v1585_v51 = vpop.eup %1584  ;;  %1466 = vmatprep.subr.mxu1 %v56_v48  ;;  %1517 = vmatprep.subr.mxu0 %v78_v49 }
  0xe9   :  { %v1587_v52 = vpop.eup %1586  ;;  %1467 = vmatpush3.msra.mxu1 %v56_v48  ;;  %1518 = vmatpush3.msra.mxu0 %v78_v49 }
  0xea   :  { %1469 = vmatmul.mubr.msk.f32.vlgmr.msra.gmra.mxu1 %vm298_vm2, %v1587_v52  ;;  %1471 = vmatprep.subr.mxu1 %v63_v50  ;;  %v1589_v58 = vpop.eup %1588 }
  0xeb   :  { %1472 = vmatpush3.msra.mxu1 %v63_v50  ;;  %1479 = vmatprep.mubr.msk.f32.mxu1 %vm298_vm2, %v1585_v51  ;;  %v1591_v60 = vpop.eup %1590 }
  0xec   :  { %1473 = vmatprep.subr.mxu1 %v62_v53  ;;  %1519 = vmatprep.subr.mxu0 %v77_v54  ;;  %v1593_v62 = vpop.eup %1592 }
  0xed   :  { %1474 = vmatpush3.msra.mxu1 %v62_v53  ;;  %1520 = vmatpush3.msra.mxu0 %v77_v54  ;;  %v1595_v0 = vpop.eup %1594 }
  0xee   :  { %1475 = vmatprep.subr.mxu1 %v61_v55  ;;  %1521 = vmatprep.subr.mxu0 %v76_v56  ;;  %v1597_v5 = vpop.eup %1596 }
  0xef   :  { %1476 = vmatpush3.msra.mxu1 %v61_v55  ;;  %1522 = vmatpush3.msra.mxu0 %v76_v56  ;;  %v1599_v6 = vpop.eup %1598 }
  0xf0   :  { %1477 = vmatprep.subr.mxu1 %v60_v59  ;;  %1523 = vmatprep.mubr.msk.f32.mxu0 %vm298_vm2, %v1589_v58  ;;  %v1601_v11 = vpop.eup %1600 }
  0xf1   :  { %1478 = vmatpush3.msra.mxu1 %v60_v59  ;;  %1524 = vmatmul.mubr.msk.f32.vlgmr.msra.gmra.mxu0 %vm298_vm2, %v1591_v60  ;;  %v1603_v12 = vpop.eup %1602 }
  0xf2   :  { %1480 = vmatmul.mubr.msk.f32.vlgmr.msra.gmra.mxu1 %vm298_vm2, %v1595_v0  ;;  %1482 = vmatprep.subr.mxu1 %v67_v61  ;;  %v1605_v16 = vpop.eup %1604 }
  0xf3   :  { %1483 = vmatpush3.msra.mxu1 %v67_v61  ;;  %1490 = vmatprep.mubr.msk.f32.mxu1 %vm298_vm2, %v1593_v62 }
  0xf4   :  { %1484 = vmatprep.subr.mxu1 %v66_v1  ;;  %1537 = vmatprep.subr.mxu0 %v51_v17 }
  0xf5   :  { %1485 = vmatpush3.msra.mxu1 %v66_v1  ;;  %1538 = vmatpush3.msra.mxu0 %v51_v17 }
  0xf6   :  { %1486 = vmatprep.subr.mxu1 %v65_v2  ;;  %1539 = vmatprep.subr.mxu0 %v50_v18 }
  0xf7   :  { %1487 = vmatpush3.msra.mxu1 %v65_v2  ;;  %1540 = vmatpush3.msra.mxu0 %v50_v18 }
  0xf8   :  { %1488 = vmatprep.subr.mxu1 %v64_v3  ;;  %1541 = vmatprep.subr.mxu0 %v49_v19 }
  0xf9   :  { %1489 = vmatpush3.msra.mxu1 %v64_v3  ;;  %1542 = vmatpush3.msra.mxu0 %v49_v19 }
  0xfa   :  { %1491 = vmatmul.mubr.msk.f32.vlgmr.msra.gmra.mxu1 %vm298_vm2, %v1599_v6  ;;  %1504 = vmatprep.subr.mxu1 %v75_v4 }
  0xfb   :  { %1505 = vmatpush3.msra.mxu1 %v75_v4  ;;  %1512 = vmatprep.mubr.msk.f32.mxu1 %vm298_vm2, %v1597_v5 }
  0xfc   :  { %1506 = vmatprep.subr.mxu1 %v74_v7  ;;  %1543 = vmatprep.subr.mxu0 %v48_v20 }
  0xfd   :  { %1507 = vmatpush3.msra.mxu1 %v74_v7  ;;  %1544 = vmatpush3.msra.mxu0 %v48_v20 }
  0xfe   :  { %1508 = vmatprep.subr.mxu1 %v73_v8 }
  0xff   :  { %1509 = vmatpush3.msra.mxu1 %v73_v8 }
 0x100   :  { %1510 = vmatprep.subr.mxu1 %v72_v9 }
 0x101   :  { %1511 = vmatpush3.msra.mxu1 %v72_v9 }
 0x102   :  { %1513 = vmatmul.mubr.msk.f32.vlgmr.msra.gmra.mxu1 %vm298_vm2, %v1603_v12  ;;  %1526 = vmatprep.subr.mxu1 %v83_v10 }
 0x103   :  { %1527 = vmatpush3.msra.mxu1 %v83_v10  ;;  %1534 = vmatprep.mubr.msk.f32.mxu1 %vm298_vm2, %v1601_v11 }
 0x104   :  { %1528 = vmatprep.subr.mxu1 %v82_v13 }
 0x105   :  { %1529 = vmatpush3.msra.mxu1 %v82_v13 }
 0x106   :  { %1530 = vmatprep.subr.mxu1 %v81_v14 }
 0x107   :  { %1531 = vmatpush3.msra.mxu1 %v81_v14 }
 0x108   :  { %1532 = vmatprep.subr.mxu1 %v80_v15 }
 0x109   :  { %1533 = vmatpush3.msra.mxu1 %v80_v15 }
 0x10a   :  { %1535 = vmatmul.mubr.msk.f32.vlgmr.msra.gmra.mxu1 %vm298_vm2, %v1605_v16 }
 0x1a2   :  { %v1459_v21 = vpop.f32.mrf.mxu1 }
 0x1a4   :  { %v371_v22 = vpop.f32.mrf.mxu1 }
 0x1a5   :  { %1606 = vtanh.f32 %v371_v22 }
 0x1a6   :  { %1608 = vtanh.f32 %v1459_v21  ;;  %v1503_v29 = vpop.f32.mrf.mxu0 }
 0x1a8   :  { %v695_v33 = vpop.f32.mrf.mxu0 }
 0x1aa   :  { %v1470_v23 = vpop.f32.mrf.mxu1 }
 0x1ac   :  { %v452_v24 = vpop.f32.mrf.mxu1 }
 0x1ad   :  { %1610 = vtanh.f32 %v452_v24 }
 0x1ae   :  { %1612 = vtanh.f32 %v1470_v23 }
 0x1b1   :  { %v1525_v35 = vpop.f32.mrf.mxu0 }
 0x1b2   :  { %v1607_v25 = vpop.eup %1606  ;;  %v1481_v26 = vpop.f32.mrf.mxu1 }
 0x1b3   :  { %v1609_v27 = vpop.eup %1608  ;;  %1545 = vmatprep.mubr.msk.f32.mxu0 %vm298_vm2, %v1607_v25  ;;  %v857_v39 = vpop.f32.mrf.mxu0 }
 0x1b4   :  { %v533_v28 = vpop.f32.mrf.mxu1  ;;  %1546 = vmatmul.mubr.msk.f32.vlgmr.msra.gmra.mxu0 %vm298_vm2, %v1609_v27 }
 0x1b5   :  { %1614 = vtanh.f32 %v533_v28 }
 0x1b6   :  { %1616 = vtanh.f32 %v1481_v26 }
 0x1ba   :  { %v1611_v30 = vpop.eup %1610  ;;  %v1492_v31 = vpop.f32.mrf.mxu1 }
 0x1bb   :  { %v1613_v32 = vpop.eup %1612  ;;  %1548 = vmatprep.mubr.msk.f32.mxu0 %vm298_vm2, %v1611_v30 }
 0x1bc   :  { %v614_v34 = vpop.f32.mrf.mxu1  ;;  %1549 = vmatmul.mubr.msk.f32.gmra.mxu0 %vm298_vm2, %v1613_v32 }
 0x1bd   :  { %1618 = vtanh.f32 %v614_v34 }
 0x1be   :  { %1620 = vtanh.f32 %v1492_v31 }
 0x1bf   :  { %1622 = vtanh.f32 %v695_v33 }
 0x1c0   :  { %1624 = vtanh.f32 %v1503_v29 }
 0x1c2   :  { %v1615_v36 = vpop.eup %1614  ;;  %v1514_v37 = vpop.f32.mrf.mxu1 }
 0x1c3   :  { %v1617_v38 = vpop.eup %1616  ;;  %1551 = vmatprep.mubr.msk.f32.mxu0 %vm298_vm2, %v1615_v36 }
 0x1c4   :  { %v776_v40 = vpop.f32.mrf.mxu1  ;;  %1552 = vmatmul.mubr.msk.f32.gmra.mxu0 %vm298_vm2, %v1617_v38 }
 0x1c5   :  { %1626 = vtanh.f32 %v776_v40 }
 0x1c6   :  { %1628 = vtanh.f32 %v1514_v37 }
 0x1c7   :  { %1630 = vtanh.f32 %v857_v39 }
 0x1c8   :  { %1632 = vtanh.f32 %v1525_v35 }
 0x1ca   :  { %v1619_v41 = vpop.eup %1618  ;;  %v1536_v42 = vpop.f32.mrf.mxu1 }
 0x1cb   :  { %v1621_v43 = vpop.eup %1620  ;;  %1554 = vmatprep.mubr.msk.f32.mxu0 %vm298_vm2, %v1619_v41 }
 0x1cc   :  { %v1623_v44 = vpop.eup %1622  ;;  %v938_v45 = vpop.f32.mrf.mxu1  ;;  %1555 = vmatmul.mubr.msk.f32.gmra.mxu0 %vm298_vm2, %v1621_v43 }
 0x1cd   :  { %1634 = vtanh.f32 %v938_v45  ;;  %1557 = vmatprep.mubr.msk.f32.mxu0 %vm298_vm2, %v1623_v44  ;;  %v1625_v46 = vpop.eup %1624 }
 0x1ce   :  { %1636 = vtanh.f32 %v1536_v42 }
 0x1d0   :  { %1558 = vmatmul.mubr.msk.f32.gmra.mxu0 %vm298_vm2, %v1625_v46 }
 0x1d2   :  { %v1627_v47 = vpop.eup %1626 }
 0x1d3   :  { %v1629_v48 = vpop.eup %1628  ;;  %1560 = vmatprep.mubr.msk.f32.mxu0 %vm298_vm2, %v1627_v47 }
 0x1d4   :  { %v1631_v49 = vpop.eup %1630  ;;  %1561 = vmatmul.mubr.msk.f32.gmra.mxu0 %vm298_vm2, %v1629_v48 }
 0x1d5   :  { %1563 = vmatprep.mubr.msk.f32.mxu0 %vm298_vm2, %v1631_v49  ;;  %v1633_v50 = vpop.eup %1632 }
 0x1d8   :  { %1564 = vmatmul.mubr.msk.f32.gmra.mxu0 %vm298_vm2, %v1633_v50 }
 0x1da   :  { %v1635_v51 = vpop.eup %1634 }
 0x1db   :  { %v1637_v52 = vpop.eup %1636  ;;  %1566 = vmatprep.mubr.msk.f32.mxu0 %vm298_vm2, %v1635_v51 }
 0x1dc   :  { %1567 = vmatmul.mubr.msk.f32.gmra.mxu0 %vm298_vm2, %v1637_v52 }
 0x274   :  { %v1547_v53 = vpop.f32.mrf.mxu0 }
 0x275   :  { %v1323_v54 = vmul.f32 -1.442695, %v1547_v53 }
 0x276   :  { %v1077_v55 = vpop.f32.mrf.mxu0 }
 0x277   :  { %1638 = vpow2.f32 %v1323_v54  ;;  %v1322_v56 = vmul.f32 -1.442695, %v1077_v55 }
 0x279   :  { %1640 = vpow2.f32 %v1322_v56 }
 0x27c   :  { %v1550_v57 = vpop.f32.mrf.mxu0 }
 0x27d   :  { %v1325_v58 = vmul.f32 -1.442695, %v1550_v57 }
 0x27e   :  { %v1087_v59 = vpop.f32.mrf.mxu0 }
 0x27f   :  { %1642 = vpow2.f32 %v1325_v58  ;;  %v1324_v60 = vmul.f32 -1.442695, %v1087_v59 }
 0x281   :  { %1644 = vpow2.f32 %v1324_v60 }
 0x284   :  { %v1639_v61 = vpop.eup %1638  ;;  %v1553_v62 = vpop.f32.mrf.mxu0 }
 0x285   :  { %v1205_v63 = vadd.f32 1.0, %v1639_v61  ;;  %v1327_v0 = vmul.f32 -1.442695, %v1553_v62 }
 0x286   :  { %v1641_v1 = vpop.eup %1640  ;;  %v1097_v2 = vpop.f32.mrf.mxu0 }
 0x287   :  { %1646 = vrcp.f32 %v1205_v63  ;;  %v1204_v3 = vadd.f32 1.0, %v1641_v1  ;;  %v1326_v4 = vmul.f32 -1.442695, %v1097_v2 }
 0x288   :  { %1648 = vpow2.f32 %v1327_v0 }
 0x289   :  { %1650 = vrcp.f32 %v1204_v3 }
 0x28a   :  { %1652 = vpow2.f32 %v1326_v4 }
 0x28c   :  { %v1643_v5 = vpop.eup %1642  ;;  %v1556_v6 = vpop.f32.mrf.mxu0 }
 0x28d   :  { %v1207_v7 = vadd.f32 1.0, %v1643_v5  ;;  %v1329_v8 = vmul.f32 -1.442695, %v1556_v6 }
 0x28e   :  { %v1645_v9 = vpop.eup %1644  ;;  %v1107_v10 = vpop.f32.mrf.mxu0 }
 0x28f   :  { %1654 = vrcp.f32 %v1207_v7  ;;  %v1206_v11 = vadd.f32 1.0, %v1645_v9  ;;  %v1328_v12 = vmul.f32 -1.442695, %v1107_v10 }
 0x290   :  { %1656 = vpow2.f32 %v1329_v8  ;;  %v1559_v13 = vpop.f32.mrf.mxu0 }
 0x291   :  { %1658 = vrcp.f32 %v1206_v11  ;;  %v1331_v14 = vmul.f32 -1.442695, %v1559_v13 }
 0x292   :  { %1660 = vpow2.f32 %v1328_v12  ;;  %v1117_v15 = vpop.f32.mrf.mxu0 }
 0x293   :  { %1662 = vpow2.f32 %v1331_v14  ;;  %v1330_v16 = vmul.f32 -1.442695, %v1117_v15 }
 0x294   :  { %v1647_v17 = vpop.eup %1646  ;;  %v1562_v18 = vpop.f32.mrf.mxu0 }
 0x295   :  { %v1649_v19 = vpop.eup %1648  ;;  %1253 = vst.msk [vmem:[%s1937_s4 + $0x8] sm:$0xff] %vm84_vm1, %v1647_v17  ;;  %1664 = vpow2.f32 %v1330_v16  ;;  %v1333_v20 = vmul.f32 -1.442695, %v1562_v18 }
 0x296   :  { %v1651_v21 = vpop.eup %1650  ;;  %v1209_v22 = vadd.f32 1.0, %v1649_v19  ;;  %v1127_v23 = vpop.f32.mrf.mxu0 }
 0x297   :  { %v1653_v24 = vpop.eup %1652  ;;  %1252 = vst.msk [vmem:[%s1937_s4] sm:$0xff] %vm84_vm1, %v1651_v21  ;;  %1666 = vpow2.f32 %v1333_v20  ;;  %v1332_v25 = vmul.f32 -1.442695, %v1127_v23 }
 0x298   :  { %1668 = vrcp.f32 %v1209_v22  ;;  %v1208_v26 = vadd.f32 1.0, %v1653_v24  ;;  %v1565_v27 = vpop.f32.mrf.mxu0 }
 0x299   :  { %1670 = vpow2.f32 %v1332_v25  ;;  %v1335_v28 = vmul.f32 -1.442695, %v1565_v27 }
 0x29a   :  { %1672 = vrcp.f32 %v1208_v26  ;;  %v1137_v29 = vpop.f32.mrf.mxu0 }
 0x29b   :  { %1674 = vpow2.f32 %v1335_v28  ;;  %v1334_v30 = vmul.f32 -1.442695, %v1137_v29 }
 0x29c   :  { %v1655_v31 = vpop.eup %1654  ;;  %v1568_v32 = vpop.f32.mrf.mxu0 }
 0x29d   :  { %v1657_v33 = vpop.eup %1656  ;;  %1255 = vst.msk [vmem:[%s1937_s4 + $0x18] sm:$0xff] %vm84_vm1, %v1655_v31  ;;  %1676 = vpow2.f32 %v1334_v30  ;;  %v1337_v34 = vmul.f32 -1.442695, %v1568_v32 }
 0x29e   :  { %v1659_v35 = vpop.eup %1658  ;;  %v1211_v36 = vadd.f32 1.0, %v1657_v33  ;;  %v1147_v37 = vpop.f32.mrf.mxu0 }
 0x29f   :  { %v1661_v38 = vpop.eup %1660  ;;  %1254 = vst.msk [vmem:[%s1937_s4 + $0x10] sm:$0xff] %vm84_vm1, %v1659_v35  ;;  %1678 = vpow2.f32 %v1337_v34  ;;  %v1336_v39 = vmul.f32 -1.442695, %v1147_v37 }
 0x2a0   :  { %v1663_v40 = vpop.eup %1662  ;;  %1680 = vrcp.f32 %v1211_v36  ;;  %v1210_v41 = vadd.f32 1.0, %v1661_v38 }
 0x2a1   :  { %v1213_v42 = vadd.f32 1.0, %v1663_v40  ;;  %1682 = vpow2.f32 %v1336_v39 }
 0x2a2   :  { %v1665_v43 = vpop.eup %1664  ;;  %1684 = vrcp.f32 %v1210_v41 }
 0x2a3   :  { %1686 = vrcp.f32 %v1213_v42  ;;  %v1212_v44 = vadd.f32 1.0, %v1665_v43 }
 0x2a4   :  { %v1667_v45 = vpop.eup %1666 }
 0x2a5   :  { %v1669_v46 = vpop.eup %1668  ;;  %1688 = vrcp.f32 %v1212_v44  ;;  %v1215_v47 = vadd.f32 1.0, %v1667_v45 }
 0x2a6   :  { %v1671_v48 = vpop.eup %1670  ;;  %1257 = vst.msk [vmem:[%s1937_s4 + $0x28] sm:$0xff] %vm84_vm1, %v1669_v46 }
 0x2a7   :  { %v1673_v49 = vpop.eup %1672  ;;  %1690 = vrcp.f32 %v1215_v47  ;;  %v1214_v50 = vadd.f32 1.0, %v1671_v48 }
 0x2a8   :  { %v1675_v51 = vpop.eup %1674  ;;  %1256 = vst.msk [vmem:[%s1937_s4 + $0x20] sm:$0xff] %vm84_vm1, %v1673_v49 }
 0x2a9   :  { %1692 = vrcp.f32 %v1214_v50  ;;  %v1217_v52 = vadd.f32 1.0, %v1675_v51 }
 0x2aa   :  { %v1677_v53 = vpop.eup %1676 }
 0x2ab   :  { %1694 = vrcp.f32 %v1217_v52  ;;  %v1216_v54 = vadd.f32 1.0, %v1677_v53 }
 0x2ac   :  { %v1679_v55 = vpop.eup %1678 }
 0x2ad   :  { %v1681_v56 = vpop.eup %1680  ;;  %1696 = vrcp.f32 %v1216_v54  ;;  %v1219_v57 = vadd.f32 1.0, %v1679_v55 }
 0x2ae   :  { %v1683_v58 = vpop.eup %1682  ;;  %1259 = vst.msk [vmem:[%s1937_s4 + $0x38] sm:$0xff] %vm84_vm1, %v1681_v56 }
 0x2af   :  { %v1685_v59 = vpop.eup %1684  ;;  %1698 = vrcp.f32 %v1219_v57  ;;  %v1218_v60 = vadd.f32 1.0, %v1683_v58 }
 0x2b0   :  { %v1687_v61 = vpop.eup %1686  ;;  %1258 = vst.msk [vmem:[%s1937_s4 + $0x30] sm:$0xff] %vm84_vm1, %v1685_v59 }
 0x2b1   :  { %1261 = vst.msk [vmem:[%s1937_s4 + $0x48] sm:$0xff] %vm84_vm1, %v1687_v61  ;;  %1700 = vrcp.f32 %v1218_v60 }
 0x2b2   :  { %v1689_v62 = vpop.eup %1688 }
 0x2b3   :  { %1260 = vst.msk [vmem:[%s1937_s4 + $0x40] sm:$0xff] %vm84_vm1, %v1689_v62 }
 0x2b4   :  { %v1691_v63 = vpop.eup %1690 }
 0x2b5   :  { %1263 = vst.msk [vmem:[%s1937_s4 + $0x58] sm:$0xff] %vm84_vm1, %v1691_v63 }
 0x2b6   :  { %v1693_v0 = vpop.eup %1692 }
 0x2b7   :  { %1262 = vst.msk [vmem:[%s1937_s4 + $0x50] sm:$0xff] %vm84_vm1, %v1693_v0 }
 0x2b8   :  { %v1695_v1 = vpop.eup %1694 }
 0x2b9   :  { %1265 = vst.msk [vmem:[%s1937_s4 + $0x68] sm:$0xff] %vm84_vm1, %v1695_v1 }
 0x2ba   :  { %v1697_v2 = vpop.eup %1696 }
 0x2bb   :  { %1264 = vst.msk [vmem:[%s1937_s4 + $0x60] sm:$0xff] %vm84_vm1, %v1697_v2 }
 0x2bc   :  { %v1699_v3 = vpop.eup %1698 }
 0x2bd   :  { %1267 = vst.msk [vmem:[%s1937_s4 + $0x78] sm:$0xff] %vm84_vm1, %v1699_v3 }
 0x2be   :  { %v1701_v4 = vpop.eup %1700 }
 0x2bf   :  { %1266 = vst.msk [vmem:[%s1937_s4 + $0x70] sm:$0xff] %vm84_vm1, %v1701_v4 }
 0x2c0   :  { %1272 = vsyncpa [#allocation3], 1 }

</bundles_post_ra>
